<compile_context>
chip_gen: v6e
topology: v6e:2x2x1
jax: 0.10.0
libtpu: 0.0.40
codegen_flags: <defaults>
</compile_context>

<pallas_src>
import math
import jax
import jax.numpy as jnp
from jax.experimental import pallas as pl
from jax.experimental.pallas import tpu as pltpu

# ---- model config (consistent with the module: dim_val=64, n_heads=4) ----
DIM_VAL = 64
N_HEADS = 4
HEAD_DIM = DIM_VAL // N_HEADS
BATCH = 2
SEQ = 8
LN_EPS = 1e-5


def _layer_norm(u, g, b):
    mu = jnp.mean(u, axis=-1, keepdims=True)
    var = jnp.mean((u - mu) ** 2, axis=-1, keepdims=True)
    return (u - mu) * jax.lax.rsqrt(var + LN_EPS) * g + b


def encoder_layer_kernel(x_ref, wqkv_ref, wown_ref, b_ref, o_ref):
    # x is pre-flattened to (B*S, D); weights arrive pre-transposed / pre-packed,
    # so every matmul is plain x @ W and all parameter slices are static ref views.
    D = DIM_VAL
    x = x_ref[...]                                   # (B*S, D) = (16, 64)
    n = x.shape[0]

    # b_slab rows: 0 bq*scale | 1 bk | 2 bv | 3 bo | 4 b2 | 5 b1 | 6 g1 | 7 be1 | 8 g2 | 9 be2

    # --- fused QKV projection: one (16,64)@(64,192) matmul ---
    qkv = jnp.dot(x, wqkv_ref[...], preferred_element_type=jnp.float32)   # (16, 192)
    q = qkv[:, 0 * D:1 * D] + b_ref[0:1, :]          # scale pre-folded into Wq/bq
    k = qkv[:, 1 * D:2 * D] + b_ref[1:2, :]
    v = qkv[:, 2 * D:3 * D] + b_ref[2:3, :]

    # Recover the batch axis (leading-dim split only; lane dim untouched).
    q3 = q.reshape(BATCH, SEQ, D)
    k3 = k.reshape(BATCH, SEQ, D)
    v3 = v.reshape(BATCH, SEQ, D)

    # Heads: trace-time unrolled loop (4 iters); within a head everything is
    # batched over B. Head contexts land in one (B*S, D) buffer so the output
    # projection is a single full-K matmul.
    ctx_heads = []
    for h in range(N_HEADS):
        lo = h * HEAD_DIM
        hi = lo + HEAD_DIM
        s = jnp.einsum("bqd,bkd->bqk", q3[:, :, lo:hi], k3[:, :, lo:hi],
                       preferred_element_type=jnp.float32)            # (B, S, S)
        s = s - jnp.max(s, axis=-1, keepdims=True)
        p = jnp.exp(s)
        p = p * pl.reciprocal(jnp.sum(p, axis=-1, keepdims=True), approx=True)
        oh = jnp.einsum("bqk,bkd->bqd", p, v3[:, :, lo:hi],
                        preferred_element_type=jnp.float32)           # (B, S, Dh)
        ctx_heads.append(oh.reshape(n, HEAD_DIM))

    ctx = jnp.concatenate(ctx_heads, axis=1)                          # (16, 64)

    # --- single output projection (attn out) ---
    a = jnp.dot(ctx, wown_ref[0:D, :],
                preferred_element_type=jnp.float32) + b_ref[3:4, :]

    # --- residual + LayerNorm 1 ---
    y = _layer_norm(a + x, b_ref[6:7, :], b_ref[7:8, :])

    # --- feed-forward: fc1(elu(fc2(y))) ---
    h2 = jnp.dot(y, wown_ref[D:2 * D, :],
                 preferred_element_type=jnp.float32) + b_ref[4:5, :]
    h2 = jnp.where(h2 > 0, h2, jnp.exp(jnp.minimum(h2, 0.0)) - 1.0)   # ELU, alpha=1
    ff = jnp.dot(h2, wown_ref[2 * D:3 * D, :],
                 preferred_element_type=jnp.float32) + b_ref[5:6, :]

    # --- residual + LayerNorm 2 ---
    z = _layer_norm(y + ff, b_ref[8:9, :], b_ref[9:10, :])
    o_ref[...] = z.astype(o_ref.dtype)


def prepare_params(params):
    """One-time packing / pre-transposition of weights (hoisted out of the call path)."""
    (wq, wk, wv, bq, bk, bv, wo, bo, w1, b1, w2, b2, g1, be1, g2, be2) = params
    scale = 1.0 / math.sqrt(HEAD_DIM)
    w_qkv = jnp.concatenate([wq.T * scale, wk.T, wv.T], axis=1)        # (D, 3D)
    w_own = jnp.concatenate([wo.T, w2.T, w1.T], axis=0)                # (3D, D)
    b_slab = jnp.concatenate([bq * scale, bk, bv, bo, b2, b1,
                              g1, be1, g2, be2], axis=0)               # (10, D)
    return w_qkv, w_own, b_slab


@jax.jit
def encoder_layer(x, w_qkv, w_own, b_slab):
    B, S, D = x.shape
    # Fold batch*seq into the matmul M dimension; reshape back outside the kernel.
    x2d = x.reshape(B * S, D)
    vmem = pl.BlockSpec(memory_space=pltpu.MemorySpace.VMEM)
    out2d = pl.pallas_call(
        encoder_layer_kernel,
        out_shape=jax.ShapeDtypeStruct((B * S, D), x.dtype),
        in_specs=[vmem] * 4,
        out_specs=vmem,
    )(x2d, w_qkv, w_own, b_slab)
    return out2d.reshape(B, S, D)


def encoder_layer_ref(x, params):
    """Pure-JAX reference implementing the PyTorch forward semantics."""
    (wq, wk, wv, bq, bk, bv, wo, bo, w1, b1, w2, b2, g1, be1, g2, be2) = params
    q = x @ wq.T + bq
    k = x @ wk.T + bk
    v = x @ wv.T + bv
    B, S, D = x.shape
    qh = q.reshape(B, S, N_HEADS, HEAD_DIM).transpose(0, 2, 1, 3)
    kh = k.reshape(B, S, N_HEADS, HEAD_DIM).transpose(0, 2, 1, 3)
    vh = v.reshape(B, S, N_HEADS, HEAD_DIM).transpose(0, 2, 1, 3)
    s = jnp.einsum("bhqd,bhkd->bhqk", qh, kh) / math.sqrt(HEAD_DIM)
    p = jax.nn.softmax(s, axis=-1)
    attn = jnp.einsum("bhqk,bhkd->bhqd", p, vh).transpose(0, 2, 1, 3).reshape(B, S, D)
    a = attn @ wo.T + bo

    def ln(u, g, b):
        mu = jnp.mean(u, axis=-1, keepdims=True)
        var = jnp.mean((u - mu) ** 2, axis=-1, keepdims=True)
        return (u - mu) / jnp.sqrt(var + LN_EPS) * g + b

    y = ln(a + x, g1, be1)
    h2 = y @ w2.T + b2
    h2 = jnp.where(h2 > 0, h2, jnp.exp(jnp.minimum(h2, 0.0)) - 1.0)
    ff = h2 @ w1.T + b1
    return ln(y + ff, g2, be2)


def make_params(key):
    D = DIM_VAL
    ks = jax.random.split(key, 10)
    sc = 1.0 / math.sqrt(D)
    wq = jax.random.uniform(ks[0], (D, D), jnp.float32, -sc, sc)
    wk = jax.random.uniform(ks[1], (D, D), jnp.float32, -sc, sc)
    wv = jax.random.uniform(ks[2], (D, D), jnp.float32, -sc, sc)
    bq = jax.random.uniform(ks[3], (1, D), jnp.float32, -sc, sc)
    bk = jax.random.uniform(ks[4], (1, D), jnp.float32, -sc, sc)
    bv = jax.random.uniform(ks[5], (1, D), jnp.float32, -sc, sc)
    wo = jax.random.uniform(ks[6], (D, D), jnp.float32, -sc, sc)
    bo = jnp.zeros((1, D), jnp.float32)                 # out_proj bias init = 0 in PyTorch
    w1 = jax.random.uniform(ks[7], (D, D), jnp.float32, -sc, sc)
    b1 = jax.random.uniform(ks[8], (1, D), jnp.float32, -sc, sc)
    w2 = jax.random.uniform(ks[9], (D, D), jnp.float32, -sc, sc)
    b2 = jax.random.uniform(jax.random.fold_in(key, 99), (1, D), jnp.float32, -sc, sc)
    g1 = jnp.ones((1, D), jnp.float32)
    be1 = jnp.zeros((1, D), jnp.float32)
    g2 = jnp.ones((1, D), jnp.float32)
    be2 = jnp.zeros((1, D), jnp.float32)
    return (wq, wk, wv, bq, bk, bv, wo, bo, w1, b1, w2, b2, g1, be1, g2, be2)


if __name__ == "__main__":
    key = jax.random.PRNGKey(0)
    kx, kp = jax.random.split(key)
    x = jax.random.normal(kx, (BATCH, SEQ, DIM_VAL), jnp.float32)
    params = make_params(kp)

    packed = prepare_params(params)       # one-time weight prep (not in the call path)
    jax.block_until_ready(packed)

    out = encoder_layer(x, *packed)
    jax.block_until_ready(out)

    ref = encoder_layer_ref(x, params)
    # Tolerance accounts for the approximate (EUP) reciprocal used for the softmax
    # denominator; all other math is exact float32.
    err = float(jnp.max(jnp.abs(out - ref)))
    assert err < 1e-2, f"mismatch vs reference: {err}"
    print("KERNEL_OK")
</pallas_src>

<mosaic_0001>
module attributes {stable_mosaic.version = 11 : i64} {
  func.func @encoder_layer_kernel(%arg0: memref<16x64xf32, #tpu.memory_space<vmem>>, %arg1: memref<64x192xf32, #tpu.memory_space<vmem>>, %arg2: memref<192x64xf32, #tpu.memory_space<vmem>>, %arg3: memref<10x64xf32, #tpu.memory_space<vmem>>, %arg4: memref<16x64xf32, #tpu.memory_space<vmem>>) attributes {dimension_semantics = [], scalar_prefetch = 0 : i64, scratch_operands = 0 : i64, tpu.core_type = #tpu.core_type<tc>} {
    %c0 = arith.constant 0 : index
    %c0_0 = arith.constant 0 : index
    %0 = vector.load %arg0[%c0, %c0_0] : memref<16x64xf32, #tpu.memory_space<vmem>>, vector<16x64xf32>
    %c0_1 = arith.constant 0 : index
    %c0_2 = arith.constant 0 : index
    %1 = vector.load %arg1[%c0_1, %c0_2] : memref<64x192xf32, #tpu.memory_space<vmem>>, vector<64x192xf32>
    %cst = arith.constant dense<0.000000e+00> : vector<16x192xf32>
    %2 = tpu.matmul %0, %1, %cst {dimension_numbers = #tpu.dot_dimension_numbers<[1], [0], [0], [1], [0, 0, 1, 1], [], []>} : vector<16x64xf32>, vector<64x192xf32>, vector<16x192xf32> -> vector<16x192xf32>
    %3 = vector.extract_strided_slice %2 {offsets = [0, 0], sizes = [16, 64], strides = [1, 1]} : vector<16x192xf32> to vector<16x64xf32>
    %c0_3 = arith.constant 0 : index
    %c0_4 = arith.constant 0 : index
    %4 = vector.load %arg3[%c0_3, %c0_4] : memref<10x64xf32, #tpu.memory_space<vmem>>, vector<1x64xf32>
    %5 = vector.broadcast %4 : vector<1x64xf32> to vector<16x64xf32>
    %6 = arith.addf %3, %5 : vector<16x64xf32>
    %7 = vector.extract_strided_slice %2 {offsets = [0, 64], sizes = [16, 64], strides = [1, 1]} : vector<16x192xf32> to vector<16x64xf32>
    %c1 = arith.constant 1 : index
    %c0_5 = arith.constant 0 : index
    %8 = vector.load %arg3[%c1, %c0_5] : memref<10x64xf32, #tpu.memory_space<vmem>>, vector<1x64xf32>
    %9 = vector.broadcast %8 : vector<1x64xf32> to vector<16x64xf32>
    %10 = arith.addf %7, %9 : vector<16x64xf32>
    %11 = vector.extract_strided_slice %2 {offsets = [0, 128], sizes = [16, 64], strides = [1, 1]} : vector<16x192xf32> to vector<16x64xf32>
    %c2 = arith.constant 2 : index
    %c0_6 = arith.constant 0 : index
    %12 = vector.load %arg3[%c2, %c0_6] : memref<10x64xf32, #tpu.memory_space<vmem>>, vector<1x64xf32>
    %13 = vector.broadcast %12 : vector<1x64xf32> to vector<16x64xf32>
    %14 = arith.addf %11, %13 : vector<16x64xf32>
    %15 = vector.shape_cast %6 : vector<16x64xf32> to vector<2x8x64xf32>
    %16 = vector.shape_cast %10 : vector<16x64xf32> to vector<2x8x64xf32>
    %17 = vector.shape_cast %14 : vector<16x64xf32> to vector<2x8x64xf32>
    %18 = vector.extract_strided_slice %15 {offsets = [0, 0, 0], sizes = [2, 8, 16], strides = [1, 1, 1]} : vector<2x8x64xf32> to vector<2x8x16xf32>
    %19 = vector.extract_strided_slice %16 {offsets = [0, 0, 0], sizes = [2, 8, 16], strides = [1, 1, 1]} : vector<2x8x64xf32> to vector<2x8x16xf32>
    "tpu.trace_start"() <{level = 10 : i32, message = "bqd,bkd->bqk"}> : () -> ()
    %cst_7 = arith.constant dense<0.000000e+00> : vector<2x8x8xf32>
    %20 = tpu.matmul %18, %19, %cst_7 {dimension_numbers = #tpu.dot_dimension_numbers<[2], [2], [1], [1], [0, 0, 0, 1, 1, 1], [0], [0]>} : vector<2x8x16xf32>, vector<2x8x16xf32>, vector<2x8x8xf32> -> vector<2x8x8xf32>
    "tpu.trace_stop"() : () -> ()
    %cst_8 = arith.constant dense<0xFF800000> : vector<2x8xf32>
    %21 = vector.multi_reduction <maximumf>, %20, %cst_8 [2] : vector<2x8x8xf32> to vector<2x8xf32>
    %22 = vector.shape_cast %21 : vector<2x8xf32> to vector<2x8x1xf32>
    %23 = vector.broadcast %22 : vector<2x8x1xf32> to vector<2x8x8xf32>
    %24 = arith.subf %20, %23 : vector<2x8x8xf32>
    %25 = math.exp %24 : vector<2x8x8xf32>
    %cst_9 = arith.constant dense<0.000000e+00> : vector<2x8xf32>
    %26 = vector.multi_reduction <add>, %25, %cst_9 [2] : vector<2x8x8xf32> to vector<2x8xf32>
    %27 = vector.shape_cast %26 : vector<2x8xf32> to vector<2x8x1xf32>
    %28 = tpu.reciprocal %27 {approx = true} : vector<2x8x1xf32> -> vector<2x8x1xf32>
    %29 = vector.broadcast %28 : vector<2x8x1xf32> to vector<2x8x8xf32>
    %30 = arith.mulf %25, %29 : vector<2x8x8xf32>
    %31 = vector.extract_strided_slice %17 {offsets = [0, 0, 0], sizes = [2, 8, 16], strides = [1, 1, 1]} : vector<2x8x64xf32> to vector<2x8x16xf32>
    "tpu.trace_start"() <{level = 10 : i32, message = "bqk,bkd->bqd"}> : () -> ()
    %cst_10 = arith.constant dense<0.000000e+00> : vector<2x8x16xf32>
    %32 = tpu.matmul %30, %31, %cst_10 {dimension_numbers = #tpu.dot_dimension_numbers<[2], [1], [1], [2], [0, 0, 0, 1, 1, 2], [0], [0]>} : vector<2x8x8xf32>, vector<2x8x16xf32>, vector<2x8x16xf32> -> vector<2x8x16xf32>
    "tpu.trace_stop"() : () -> ()
    %33 = vector.shape_cast %32 : vector<2x8x16xf32> to vector<16x16xf32>
    %34 = vector.extract_strided_slice %15 {offsets = [0, 0, 16], sizes = [2, 8, 16], strides = [1, 1, 1]} : vector<2x8x64xf32> to vector<2x8x16xf32>
    %35 = vector.extract_strided_slice %16 {offsets = [0, 0, 16], sizes = [2, 8, 16], strides = [1, 1, 1]} : vector<2x8x64xf32> to vector<2x8x16xf32>
    "tpu.trace_start"() <{level = 10 : i32, message = "bqd,bkd->bqk"}> : () -> ()
    %cst_11 = arith.constant dense<0.000000e+00> : vector<2x8x8xf32>
    %36 = tpu.matmul %34, %35, %cst_11 {dimension_numbers = #tpu.dot_dimension_numbers<[2], [2], [1], [1], [0, 0, 0, 1, 1, 1], [0], [0]>} : vector<2x8x16xf32>, vector<2x8x16xf32>, vector<2x8x8xf32> -> vector<2x8x8xf32>
    "tpu.trace_stop"() : () -> ()
    %cst_12 = arith.constant dense<0xFF800000> : vector<2x8xf32>
    %37 = vector.multi_reduction <maximumf>, %36, %cst_12 [2] : vector<2x8x8xf32> to vector<2x8xf32>
    %38 = vector.shape_cast %37 : vector<2x8xf32> to vector<2x8x1xf32>
    %39 = vector.broadcast %38 : vector<2x8x1xf32> to vector<2x8x8xf32>
    %40 = arith.subf %36, %39 : vector<2x8x8xf32>
    %41 = math.exp %40 : vector<2x8x8xf32>
    %cst_13 = arith.constant dense<0.000000e+00> : vector<2x8xf32>
    %42 = vector.multi_reduction <add>, %41, %cst_13 [2] : vector<2x8x8xf32> to vector<2x8xf32>
    %43 = vector.shape_cast %42 : vector<2x8xf32> to vector<2x8x1xf32>
    %44 = tpu.reciprocal %43 {approx = true} : vector<2x8x1xf32> -> vector<2x8x1xf32>
    %45 = vector.broadcast %44 : vector<2x8x1xf32> to vector<2x8x8xf32>
    %46 = arith.mulf %41, %45 : vector<2x8x8xf32>
    %47 = vector.extract_strided_slice %17 {offsets = [0, 0, 16], sizes = [2, 8, 16], strides = [1, 1, 1]} : vector<2x8x64xf32> to vector<2x8x16xf32>
    "tpu.trace_start"() <{level = 10 : i32, message = "bqk,bkd->bqd"}> : () -> ()
    %cst_14 = arith.constant dense<0.000000e+00> : vector<2x8x16xf32>
    %48 = tpu.matmul %46, %47, %cst_14 {dimension_numbers = #tpu.dot_dimension_numbers<[2], [1], [1], [2], [0, 0, 0, 1, 1, 2], [0], [0]>} : vector<2x8x8xf32>, vector<2x8x16xf32>, vector<2x8x16xf32> -> vector<2x8x16xf32>
    "tpu.trace_stop"() : () -> ()
    %49 = vector.shape_cast %48 : vector<2x8x16xf32> to vector<16x16xf32>
    %50 = vector.extract_strided_slice %15 {offsets = [0, 0, 32], sizes = [2, 8, 16], strides = [1, 1, 1]} : vector<2x8x64xf32> to vector<2x8x16xf32>
    %51 = vector.extract_strided_slice %16 {offsets = [0, 0, 32], sizes = [2, 8, 16], strides = [1, 1, 1]} : vector<2x8x64xf32> to vector<2x8x16xf32>
    "tpu.trace_start"() <{level = 10 : i32, message = "bqd,bkd->bqk"}> : () -> ()
    %cst_15 = arith.constant dense<0.000000e+00> : vector<2x8x8xf32>
    %52 = tpu.matmul %50, %51, %cst_15 {dimension_numbers = #tpu.dot_dimension_numbers<[2], [2], [1], [1], [0, 0, 0, 1, 1, 1], [0], [0]>} : vector<2x8x16xf32>, vector<2x8x16xf32>, vector<2x8x8xf32> -> vector<2x8x8xf32>
    "tpu.trace_stop"() : () -> ()
    %cst_16 = arith.constant dense<0xFF800000> : vector<2x8xf32>
    %53 = vector.multi_reduction <maximumf>, %52, %cst_16 [2] : vector<2x8x8xf32> to vector<2x8xf32>
    %54 = vector.shape_cast %53 : vector<2x8xf32> to vector<2x8x1xf32>
    %55 = vector.broadcast %54 : vector<2x8x1xf32> to vector<2x8x8xf32>
    %56 = arith.subf %52, %55 : vector<2x8x8xf32>
    %57 = math.exp %56 : vector<2x8x8xf32>
    %cst_17 = arith.constant dense<0.000000e+00> : vector<2x8xf32>
    %58 = vector.multi_reduction <add>, %57, %cst_17 [2] : vector<2x8x8xf32> to vector<2x8xf32>
    %59 = vector.shape_cast %58 : vector<2x8xf32> to vector<2x8x1xf32>
    %60 = tpu.reciprocal %59 {approx = true} : vector<2x8x1xf32> -> vector<2x8x1xf32>
    %61 = vector.broadcast %60 : vector<2x8x1xf32> to vector<2x8x8xf32>
    %62 = arith.mulf %57, %61 : vector<2x8x8xf32>
    %63 = vector.extract_strided_slice %17 {offsets = [0, 0, 32], sizes = [2, 8, 16], strides = [1, 1, 1]} : vector<2x8x64xf32> to vector<2x8x16xf32>
    "tpu.trace_start"() <{level = 10 : i32, message = "bqk,bkd->bqd"}> : () -> ()
    %cst_18 = arith.constant dense<0.000000e+00> : vector<2x8x16xf32>
    %64 = tpu.matmul %62, %63, %cst_18 {dimension_numbers = #tpu.dot_dimension_numbers<[2], [1], [1], [2], [0, 0, 0, 1, 1, 2], [0], [0]>} : vector<2x8x8xf32>, vector<2x8x16xf32>, vector<2x8x16xf32> -> vector<2x8x16xf32>
    "tpu.trace_stop"() : () -> ()
    %65 = vector.shape_cast %64 : vector<2x8x16xf32> to vector<16x16xf32>
    %66 = vector.extract_strided_slice %15 {offsets = [0, 0, 48], sizes = [2, 8, 16], strides = [1, 1, 1]} : vector<2x8x64xf32> to vector<2x8x16xf32>
    %67 = vector.extract_strided_slice %16 {offsets = [0, 0, 48], sizes = [2, 8, 16], strides = [1, 1, 1]} : vector<2x8x64xf32> to vector<2x8x16xf32>
    "tpu.trace_start"() <{level = 10 : i32, message = "bqd,bkd->bqk"}> : () -> ()
    %cst_19 = arith.constant dense<0.000000e+00> : vector<2x8x8xf32>
    %68 = tpu.matmul %66, %67, %cst_19 {dimension_numbers = #tpu.dot_dimension_numbers<[2], [2], [1], [1], [0, 0, 0, 1, 1, 1], [0], [0]>} : vector<2x8x16xf32>, vector<2x8x16xf32>, vector<2x8x8xf32> -> vector<2x8x8xf32>
    "tpu.trace_stop"() : () -> ()
    %cst_20 = arith.constant dense<0xFF800000> : vector<2x8xf32>
    %69 = vector.multi_reduction <maximumf>, %68, %cst_20 [2] : vector<2x8x8xf32> to vector<2x8xf32>
    %70 = vector.shape_cast %69 : vector<2x8xf32> to vector<2x8x1xf32>
    %71 = vector.broadcast %70 : vector<2x8x1xf32> to vector<2x8x8xf32>
    %72 = arith.subf %68, %71 : vector<2x8x8xf32>
    %73 = math.exp %72 : vector<2x8x8xf32>
    %cst_21 = arith.constant dense<0.000000e+00> : vector<2x8xf32>
    %74 = vector.multi_reduction <add>, %73, %cst_21 [2] : vector<2x8x8xf32> to vector<2x8xf32>
    %75 = vector.shape_cast %74 : vector<2x8xf32> to vector<2x8x1xf32>
    %76 = tpu.reciprocal %75 {approx = true} : vector<2x8x1xf32> -> vector<2x8x1xf32>
    %77 = vector.broadcast %76 : vector<2x8x1xf32> to vector<2x8x8xf32>
    %78 = arith.mulf %73, %77 : vector<2x8x8xf32>
    %79 = vector.extract_strided_slice %17 {offsets = [0, 0, 48], sizes = [2, 8, 16], strides = [1, 1, 1]} : vector<2x8x64xf32> to vector<2x8x16xf32>
    "tpu.trace_start"() <{level = 10 : i32, message = "bqk,bkd->bqd"}> : () -> ()
    %cst_22 = arith.constant dense<0.000000e+00> : vector<2x8x16xf32>
    %80 = tpu.matmul %78, %79, %cst_22 {dimension_numbers = #tpu.dot_dimension_numbers<[2], [1], [1], [2], [0, 0, 0, 1, 1, 2], [0], [0]>} : vector<2x8x8xf32>, vector<2x8x16xf32>, vector<2x8x16xf32> -> vector<2x8x16xf32>
    "tpu.trace_stop"() : () -> ()
    %81 = vector.shape_cast %80 : vector<2x8x16xf32> to vector<16x16xf32>
    %82 = tpu.concatenate %33, %49, %65, %81 in 1 : vector<16x16xf32>, vector<16x16xf32>, vector<16x16xf32>, vector<16x16xf32> -> vector<16x64xf32>
    %c0_23 = arith.constant 0 : index
    %c0_24 = arith.constant 0 : index
    %83 = vector.load %arg2[%c0_23, %c0_24] : memref<192x64xf32, #tpu.memory_space<vmem>>, vector<64x64xf32>
    %cst_25 = arith.constant dense<0.000000e+00> : vector<16x64xf32>
    %84 = tpu.matmul %82, %83, %cst_25 {dimension_numbers = #tpu.dot_dimension_numbers<[1], [0], [0], [1], [0, 0, 1, 1], [], []>} : vector<16x64xf32>, vector<64x64xf32>, vector<16x64xf32> -> vector<16x64xf32>
    %c3 = arith.constant 3 : index
    %c0_26 = arith.constant 0 : index
    %85 = vector.load %arg3[%c3, %c0_26] : memref<10x64xf32, #tpu.memory_space<vmem>>, vector<1x64xf32>
    %86 = vector.broadcast %85 : vector<1x64xf32> to vector<16x64xf32>
    %87 = arith.addf %84, %86 : vector<16x64xf32>
    %88 = arith.addf %87, %0 : vector<16x64xf32>
    %c6 = arith.constant 6 : index
    %c0_27 = arith.constant 0 : index
    %89 = vector.load %arg3[%c6, %c0_27] : memref<10x64xf32, #tpu.memory_space<vmem>>, vector<1x64xf32>
    %c7 = arith.constant 7 : index
    %c0_28 = arith.constant 0 : index
    %90 = vector.load %arg3[%c7, %c0_28] : memref<10x64xf32, #tpu.memory_space<vmem>>, vector<1x64xf32>
    %cst_29 = arith.constant dense<0.000000e+00> : vector<16xf32>
    %91 = vector.multi_reduction <add>, %88, %cst_29 [1] : vector<16x64xf32> to vector<16xf32>
    %92 = vector.shape_cast %91 : vector<16xf32> to vector<16x1xf32>
    %cst_30 = arith.constant 6.400000e+01 : f32
    %93 = vector.broadcast %cst_30 : f32 to vector<16x1xf32>
    %94 = arith.divf %92, %93 : vector<16x1xf32>
    %95 = vector.broadcast %94 : vector<16x1xf32> to vector<16x64xf32>
    %96 = arith.subf %88, %95 : vector<16x64xf32>
    %97 = arith.mulf %96, %96 : vector<16x64xf32>
    %cst_31 = arith.constant dense<0.000000e+00> : vector<16xf32>
    %98 = vector.multi_reduction <add>, %97, %cst_31 [1] : vector<16x64xf32> to vector<16xf32>
    %99 = vector.shape_cast %98 : vector<16xf32> to vector<16x1xf32>
    %cst_32 = arith.constant 6.400000e+01 : f32
    %100 = vector.broadcast %cst_32 : f32 to vector<16x1xf32>
    %101 = arith.divf %99, %100 : vector<16x1xf32>
    %102 = vector.broadcast %94 : vector<16x1xf32> to vector<16x64xf32>
    %103 = arith.subf %88, %102 : vector<16x64xf32>
    %cst_33 = arith.constant 9.99999974E-6 : f32
    %104 = vector.broadcast %cst_33 : f32 to vector<16x1xf32>
    %105 = arith.addf %101, %104 : vector<16x1xf32>
    %106 = math.rsqrt %105 : vector<16x1xf32>
    %107 = vector.broadcast %106 : vector<16x1xf32> to vector<16x64xf32>
    %108 = arith.mulf %103, %107 : vector<16x64xf32>
    %109 = vector.broadcast %89 : vector<1x64xf32> to vector<16x64xf32>
    %110 = arith.mulf %108, %109 : vector<16x64xf32>
    %111 = vector.broadcast %90 : vector<1x64xf32> to vector<16x64xf32>
    %112 = arith.addf %110, %111 : vector<16x64xf32>
    %c64 = arith.constant 64 : index
    %c0_34 = arith.constant 0 : index
    %113 = vector.load %arg2[%c64, %c0_34] : memref<192x64xf32, #tpu.memory_space<vmem>>, vector<64x64xf32>
    %cst_35 = arith.constant dense<0.000000e+00> : vector<16x64xf32>
    %114 = tpu.matmul %112, %113, %cst_35 {dimension_numbers = #tpu.dot_dimension_numbers<[1], [0], [0], [1], [0, 0, 1, 1], [], []>} : vector<16x64xf32>, vector<64x64xf32>, vector<16x64xf32> -> vector<16x64xf32>
    %c4 = arith.constant 4 : index
    %c0_36 = arith.constant 0 : index
    %115 = vector.load %arg3[%c4, %c0_36] : memref<10x64xf32, #tpu.memory_space<vmem>>, vector<1x64xf32>
    %116 = vector.broadcast %115 : vector<1x64xf32> to vector<16x64xf32>
    %117 = arith.addf %114, %116 : vector<16x64xf32>
    %cst_37 = arith.constant 0.000000e+00 : f32
    %118 = vector.broadcast %cst_37 : f32 to vector<16x64xf32>
    %119 = arith.cmpf ogt, %117, %118 : vector<16x64xf32>
    %cst_38 = arith.constant 0.000000e+00 : f32
    %120 = vector.broadcast %cst_38 : f32 to vector<16x64xf32>
    %121 = arith.minimumf %117, %120 : vector<16x64xf32>
    %122 = math.exp %121 : vector<16x64xf32>
    %cst_39 = arith.constant 1.000000e+00 : f32
    %123 = vector.broadcast %cst_39 : f32 to vector<16x64xf32>
    %124 = arith.subf %122, %123 : vector<16x64xf32>
    %125 = arith.select %119, %117, %124 : vector<16x64xi1>, vector<16x64xf32>
    %c128 = arith.constant 128 : index
    %c0_40 = arith.constant 0 : index
    %126 = vector.load %arg2[%c128, %c0_40] : memref<192x64xf32, #tpu.memory_space<vmem>>, vector<64x64xf32>
    %cst_41 = arith.constant dense<0.000000e+00> : vector<16x64xf32>
    %127 = tpu.matmul %125, %126, %cst_41 {dimension_numbers = #tpu.dot_dimension_numbers<[1], [0], [0], [1], [0, 0, 1, 1], [], []>} : vector<16x64xf32>, vector<64x64xf32>, vector<16x64xf32> -> vector<16x64xf32>
    %c5 = arith.constant 5 : index
    %c0_42 = arith.constant 0 : index
    %128 = vector.load %arg3[%c5, %c0_42] : memref<10x64xf32, #tpu.memory_space<vmem>>, vector<1x64xf32>
    %129 = vector.broadcast %128 : vector<1x64xf32> to vector<16x64xf32>
    %130 = arith.addf %127, %129 : vector<16x64xf32>
    %131 = arith.addf %112, %130 : vector<16x64xf32>
    %c8 = arith.constant 8 : index
    %c0_43 = arith.constant 0 : index
    %132 = vector.load %arg3[%c8, %c0_43] : memref<10x64xf32, #tpu.memory_space<vmem>>, vector<1x64xf32>
    %c9 = arith.constant 9 : index
    %c0_44 = arith.constant 0 : index
    %133 = vector.load %arg3[%c9, %c0_44] : memref<10x64xf32, #tpu.memory_space<vmem>>, vector<1x64xf32>
    %cst_45 = arith.constant dense<0.000000e+00> : vector<16xf32>
    %134 = vector.multi_reduction <add>, %131, %cst_45 [1] : vector<16x64xf32> to vector<16xf32>
    %135 = vector.shape_cast %134 : vector<16xf32> to vector<16x1xf32>
    %cst_46 = arith.constant 6.400000e+01 : f32
    %136 = vector.broadcast %cst_46 : f32 to vector<16x1xf32>
    %137 = arith.divf %135, %136 : vector<16x1xf32>
    %138 = vector.broadcast %137 : vector<16x1xf32> to vector<16x64xf32>
    %139 = arith.subf %131, %138 : vector<16x64xf32>
    %140 = arith.mulf %139, %139 : vector<16x64xf32>
    %cst_47 = arith.constant dense<0.000000e+00> : vector<16xf32>
    %141 = vector.multi_reduction <add>, %140, %cst_47 [1] : vector<16x64xf32> to vector<16xf32>
    %142 = vector.shape_cast %141 : vector<16xf32> to vector<16x1xf32>
    %cst_48 = arith.constant 6.400000e+01 : f32
    %143 = vector.broadcast %cst_48 : f32 to vector<16x1xf32>
    %144 = arith.divf %142, %143 : vector<16x1xf32>
    %145 = vector.broadcast %137 : vector<16x1xf32> to vector<16x64xf32>
    %146 = arith.subf %131, %145 : vector<16x64xf32>
    %cst_49 = arith.constant 9.99999974E-6 : f32
    %147 = vector.broadcast %cst_49 : f32 to vector<16x1xf32>
    %148 = arith.addf %144, %147 : vector<16x1xf32>
    %149 = math.rsqrt %148 : vector<16x1xf32>
    %150 = vector.broadcast %149 : vector<16x1xf32> to vector<16x64xf32>
    %151 = arith.mulf %146, %150 : vector<16x64xf32>
    %152 = vector.broadcast %132 : vector<1x64xf32> to vector<16x64xf32>
    %153 = arith.mulf %151, %152 : vector<16x64xf32>
    %154 = vector.broadcast %133 : vector<1x64xf32> to vector<16x64xf32>
    %155 = arith.addf %153, %154 : vector<16x64xf32>
    %c0_50 = arith.constant 0 : index
    %c0_51 = arith.constant 0 : index
    %156 = vector.load %arg4[%c0_50, %c0_51] : memref<16x64xf32, #tpu.memory_space<vmem>>, vector<16x64xf32>
    tpu.vector_store %arg4[%c0_50, %c0_51], %155 {strides = array<i32>} : memref<16x64xf32, #tpu.memory_space<vmem>>, vector<16x64xf32>,
    return
  }
}

</mosaic_0001>

<bundles_post_ra>
// kernel: encoder_layer.1
= control target key start
LH: loop header
LB: loop body
LE: loop exit
PB: predicated region body
PF: predicated region fallthrough
CT: control target
= control target key end

     0   :  { %v2213_v4 = vmov 0.0   ;;  %s2602_s0 = inlined_call_operand.vmem [shape: f32[16,64], index: 0, kind: input, shape index: {}]   ;;  %s2603_s1 = inlined_call_operand.vmem [shape: f32[64,192], index: 1, kind: input, shape index: {}]   ;;  %s2604_s2 = inlined_call_operand.vmem [shape: f32[192,64], index: 2, kind: input, shape index: {}]   ;;  %s2605_s3 = inlined_call_operand.vmem [shape: f32[10,64], index: 3, kind: input, shape index: {}]   ;;  %s2606_s4 = inlined_call_operand.hbm [shape: f32[16,64], index: 4, kind: output, shape index: {}]  }
   0x1   :  { %v35_v0 = vld [vmem:[%s2603_s1 + $0x78] sm:$0xff]  ;;  %v34_v1 = vld [vmem:[%s2603_s1 + $0x70] sm:$0xff]  ;;  %v33_v2 = vld [vmem:[%s2603_s1 + $0x68] sm:$0xff]  ;;  %107 = vmatprep.mubr.f32.mxu0 %v2213_v4  ;;  %2003 = vmatprep.subr.mxu1 %v2213_v4 }
   0x2   :  { %59 = vmatprep.subr.mxu0 %v35_v0  ;;  %v32_v3 = vld [vmem:[%s2603_s1 + $0x60] sm:$0xff]  ;;  %v31_v5 = vld [vmem:[%s2603_s1 + $0x58] sm:$0xff]  ;;  %v30_v6 = vld [vmem:[%s2603_s1 + $0x50] sm:$0xff] }
   0x3   :  { %60 = vmatpush1.msra.mxu0 %v34_v1  ;;  %v29_v7 = vld [vmem:[%s2603_s1 + $0x48] sm:$0xff]  ;;  %v28_v8 = vld [vmem:[%s2603_s1 + $0x40] sm:$0xff]  ;;  %v27_v9 = vld [vmem:[%s2603_s1 + $0x38] sm:$0xff] }
   0x4   :  { %61 = vmatprep.subr.mxu0 %v33_v2  ;;  %v1895_v10 = vld [vmem:[%s2605_s3 + $0x1] ss:$0 sm:$0xff] }
   0x5   :  { %62 = vmatpush1.msra.mxu0 %v32_v3 }
   0x6   :  { %63 = vmatprep.subr.mxu0 %v31_v5 }
   0x7   :  { %64 = vmatpush1.msra.mxu0 %v30_v6 }
   0x8   :  { %9 = vsyncpa [#allocation3], 0  ;;  %65 = vmatprep.subr.mxu0 %v29_v7  ;;  %v26_v11 = vld [vmem:[%s2603_s1 + $0x30] sm:$0xff]  ;;  %s2214_s11 = smov 64   ;;  %v25_v12 = vld [vmem:[%s2603_s1 + $0x28] sm:$0xff]  ;;  %vm36_vm0 = vcmask 523264  }
   0x9   :  { %133 = vrot.lane.b32.xlu0 %v1895_v10, %s2214_s11  ;;  %66 = vmatpush1.msra.mxu0 %v28_v8  ;;  %v24_v13 = vld [vmem:[%s2603_s1 + $0x20] sm:$0xff]  ;;  %v23_v14 = vld [vmem:[%s2603_s1 + $0x18] sm:$0xff]  ;;  %v22_v15 = vld [vmem:[%s2603_s1 + $0x10] sm:$0xff]  ;;  %vm2215_vm1 = vmmov 0   ;;  %vm148_vm2 = vcmask 130048   ;;  %vm302_vm3 = vcmask 64512  }
   0xa   :  { %67 = vmatprep.subr.mxu0 %v27_v9  ;;  %v21_v16 = vld [vmem:[%s2603_s1 + $0x8] sm:$0xff]  ;;  %v20_v17 = vld [vmem:[%s2603_s1] sm:$0xff]  ;;  %2005 = vmatprep.mubr.msk.f32.mxu1 %vm2215_vm1, %v2213_v4  ;;  %s2216_s30 = smov 48   ;;  %s2217_s5 = smov 112   ;;  %vm1489_vm4 = vcmask 261120   ;;  %vm1492_vm5 = vcmask 392192  }
   0xb   :  { %68 = vmatpush1.msra.mxu0 %v26_v11  ;;  %v2307_v18 = vld [vmem:[%s2602_s0] sm:$0xff]  ;;  %v2316_v19 = vld [vmem:[%s2602_s0 + $0x8] sm:$0xff]  ;;  %s2218_s6 = smov 32   ;;  %s2219_s7 = smov 96  }
   0xc   :  { %69 = vmatprep.subr.mxu0 %v25_v12  ;;  %v1894_v26 = vld [vmem:[%s2605_s3] ss:$0 sm:$0xff]  ;;  %v1896_v29 = vld [vmem:[%s2605_s3 + $0x2] ss:$0 sm:$0xff]  ;;  %s2220_s8 = smov 16   ;;  %s2221_s9 = smov 80  }
   0xd   :  { %70 = vmatpush1.msra.mxu0 %v24_v13  ;;  %s2222_s15 = smov [#allocation2]  }
   0xe   :  { %71 = vmatprep.subr.mxu0 %v23_v14  ;;  %s1881_s16 = sshll.u32 %s2222_s15, 4  ;;  %s1882_s16 = int_to_ptr.vmem [resolvable:$true] %s1881_s16 }
   0xf   :  { %72 = vmatpush1.msra.mxu0 %v22_v15  ;;  %s2191_s17 = scalar_lea.vmem %s1882_s16, 256  ;;  %p2196_p1 = scmp.lt.s32.totalorder %s1882_s16, %s1882_s16 }
  0x10   :  { %73 = vmatprep.subr.mxu0 %v21_v16  ;;  %p2192_p0 = scmp.ne.s32.totalorder %s1882_s16, %s2191_s17  ;;  %p2197_p2 = scmp.lt.s32.totalorder %s2191_s17, %s2191_s17 }
  0x11   :  { %74 = vmatpush1.msra.mxu0 %v20_v17 }
  0x12   :  { %1892 = vmatmul.mubr.msk.f32.vlgmr.msra.gmra.mxu0 %vm36_vm0, %v2307_v18  ;;  %1998 = vmatprep.subr.mxu0 %v2213_v4  ;;  %p2198_p3 = por %p2197_p2, %p2196_p1 }
  0x13   :  { %113 = vmatprep.mubr.f32.mxu0 %v2213_v4 }
  0x14   :  { %p2199_p4 = pnand %p2198_p3, %p2192_p0 }
  0x16   :  { %1893 = vmatmul.mubr.msk.f32.gmra.mxu0 %vm36_vm0, %v2316_v19 }
  0x17   :  { %2000 = vmatprep.mubr.msk.f32.mxu0 %vm2215_vm1, %v2213_v4 }
  0x7b   :  { %v134_v20 = vpop.permute.xlu0 %133 }
  0xd2   :  { %v109_v21 = vpop.f32.mrf.mxu0 }
  0xd3   :  { %v2324_v22 = vadd.f32 %v134_v20, %v109_v21  ;;  %v2336_v28 = vadd.f32 %v1894_v26, %v109_v21 }
  0xd4   :  { %v111_v23 = vpop.f32.mrf.mxu0 }
  0xd5   :  { %146 = vrot.lane.b32.xlu0 %v2324_v22, %s2214_s11  ;;  %v2350_v32 = vadd.f32 %v1896_v29, %v111_v23 }
  0xd6   :  { %v115_v24 = vpop.f32.mrf.mxu0 }
  0xd7   :  { %v2328_v25 = vadd.f32 %v134_v20, %v115_v24  ;;  %v2347_v31 = vadd.f32 %v1894_v26, %v115_v24 }
  0xd8   :  { %v117_v33 = vpop.f32.mrf.mxu0 }
  0xd9   :  { %225 = vrot.lane.b32.xlu1 %v2328_v25, %s2214_s11  ;;  %v2375_v57 = vadd.f32 %v1896_v29, %v117_v33 }
 0x147   :  { %v147_v27 = vpop.permute.xlu0 %146 }
 0x148   :  { %1999 = vmatpush3.xpose.msk.msra.mxu0 %vm148_vm2, %v147_v27 }
 0x149   :  { %2023 = vmatprep.subr.mxu0 %v2213_v4 }
 0x14b   :  { %2001 = vmatmul.mubr.msk.f32.vlgmr.msra.gmra.mxu0 %vm148_vm2, %v2336_v28  ;;  %v226_v30 = vpop.permute.xlu1 %225 }
 0x14c   :  { %2004 = vmatpush3.xpose.msk.msra.mxu1 %vm148_vm2, %v226_v30  ;;  %2025 = vmatprep.mubr.msk.f32.mxu0 %vm2215_vm1, %v2213_v4 }
 0x14d   :  { %2008 = vmatprep.subr.mxu1 %v2213_v4 }
 0x14f   :  { %2006 = vmatmul.mubr.msk.f32.vlgmr.msra.gmra.mxu1 %vm148_vm2, %v2347_v31 }
 0x150   :  { %2009 = vmatpush3.msra.mxu1 %v2350_v32  ;;  %2010 = vmatprep.mubr.msk.f32.mxu1 %vm2215_vm1, %v2213_v4 }
 0x151   :  { %2013 = vmatprep.subr.mxu1 %v2213_v4 }
 0x20b   :  { %v220_v34 = vpop.f32.mrf.mxu0 }
 0x20c   :  { %v303_v35 = vsel %vm302_vm3, %v220_v34, -inf }
 0x20d   :  { %304 = vmax.xlane.f32.xlu1 %v303_v35  ;;  %v2002_v36 = vpop.f32.mrf.mxu0 }
 0x20f   :  { %v298_v37 = vpop.f32.mrf.mxu1 }
 0x210   :  { %v306_v38 = vsel %vm302_vm3, %v298_v37, -inf }
 0x211   :  { %307 = vmax.xlane.f32.xlu0 %v306_v38  ;;  %v2007_v39 = vpop.f32.mrf.mxu1 }
 0x21e   :  { %551 = vrot.lane.b32.xlu1 %v2328_v25, %s2216_s30 }
 0x296   :  { %v305_v40 = vpop.xlane.xlu1 %304 }
 0x297   :  { %v309_v41 = vsub.f32 %v220_v34, %v305_v40 }
 0x299   :  { %v311_v42 = vmul.f32 1.442695, %v309_v41 }
 0x29a   :  { %v308_v43 = vpop.xlane.xlu0 %307  ;;  %v552_v44 = vpop.permute.xlu1 %551 }
 0x29b   :  { %2147 = vpow2.f32 %v311_v42  ;;  %v310_v45 = vsub.f32 %v298_v37, %v308_v43  ;;  %2024 = vmatpush3.xpose.msk.msra.mxu0 %vm148_vm2, %v552_v44 }
 0x29c   :  { %2033 = vmatprep.subr.mxu0 %v2213_v4 }
 0x29d   :  { %v313_v46 = vmul.f32 1.442695, %v310_v45 }
 0x29f   :  { %2149 = vpow2.f32 %v313_v46 }
 0x2a8   :  { %v2148_v47 = vpop.eup %2147 }
 0x2a9   :  { %v315_v48 = vsel %vm302_vm3, %v2148_v47, 0.0 }
 0x2aa   :  { %316 = vadd.xlane.f32.xlu0 %v315_v48 }
 0x2ac   :  { %v2150_v49 = vpop.eup %2149 }
 0x2ad   :  { %v318_v50 = vsel %vm302_vm3, %v2150_v49, 0.0 }
 0x2ae   :  { %319 = vadd.xlane.f32.xlu1 %v318_v50 }
 0x2bf   :  { %471 = vrot.lane.b32.xlu1 %v2336_v28, %s2217_s5 }
 0x2c0   :  { %473 = vrot.lane.b32.xlu0 %v2324_v22, %s2216_s30 }
 0x2c4   :  { %549 = vrot.lane.b32.xlu0 %v2347_v31, %s2217_s5 }
 0x333   :  { %v317_v51 = vpop.xlane.xlu0 %316 }
 0x334   :  { %2151 = vrcp.f32 %v317_v51 }
 0x337   :  { %v474_v52 = vpop.permute.xlu0 %473  ;;  %v320_v53 = vpop.xlane.xlu1 %319 }
 0x338   :  { %2153 = vrcp.f32 %v320_v53 }
 0x33b   :  { %v550_v54 = vpop.permute.xlu0 %549  ;;  %v472_v60 = vpop.permute.xlu1 %471 }
 0x33c   :  { %2026 = vmatmul.mubr.msk.f32.vlgmr.msra.gmra.mxu0 %vm148_vm2, %v550_v54 }
 0x33d   :  { %2035 = vmatprep.mubr.msk.f32.mxu0 %vm2215_vm1, %v2213_v4 }
 0x341   :  { %v2152_v55 = vpop.eup %2151 }
 0x342   :  { %v323_v56 = vmul.f32 %v2152_v55, %v2148_v47 }
 0x344   :  { %2011 = vmatmul.mubr.msk.f32.vlgmr.msra.gmra.mxu1 %vm302_vm3, %v323_v56 }
 0x345   :  { %v2154_v58 = vpop.eup %2153  ;;  %2014 = vmatpush3.msra.mxu1 %v2375_v57  ;;  %2015 = vmatprep.mubr.msk.f32.mxu1 %vm2215_vm1, %v2213_v4 }
 0x346   :  { %2018 = vmatprep.subr.mxu1 %v2213_v4  ;;  %v324_v59 = vmul.f32 %v2154_v58, %v2150_v49 }
 0x348   :  { %2016 = vmatmul.mubr.msk.f32.vlgmr.msra.gmra.mxu1 %vm302_vm3, %v324_v59 }
 0x349   :  { %2019 = vmatpush3.xpose.msk.msra.mxu1 %vm148_vm2, %v474_v52  ;;  %2020 = vmatprep.mubr.msk.f32.mxu1 %vm2215_vm1, %v2213_v4 }
 0x34a   :  { %2028 = vmatprep.subr.mxu1 %v2213_v4 }
 0x34c   :  { %2021 = vmatmul.mubr.msk.f32.vlgmr.msra.gmra.mxu1 %vm148_vm2, %v472_v60 }
 0x34d   :  { %2030 = vmatprep.mubr.msk.f32.mxu1 %vm2215_vm1, %v2213_v4 }
 0x3fc   :  { %v623_v61 = vpop.f32.mrf.mxu0 }
 0x3fd   :  { %v630_v62 = vsel %vm302_vm3, %v623_v61, -inf }
 0x3fe   :  { %631 = vmax.xlane.f32.xlu0 %v630_v62  ;;  %v2027_v63 = vpop.f32.mrf.mxu0 }
 0x404   :  { %v2391_v0 = vpop.f32.mrf.mxu1 }
 0x406   :  { %v2012_v1 = vpop.f32.mrf.mxu1 }
 0x408   :  { %v2393_v2 = vpop.f32.mrf.mxu1 }
 0x40a   :  { %v2017_v3 = vpop.f32.mrf.mxu1 }
 0x40c   :  { %v545_v5 = vpop.f32.mrf.mxu1 }
 0x40d   :  { %v627_v6 = vsel %vm302_vm3, %v545_v5, -inf }
 0x40e   :  { %628 = vmax.xlane.f32.xlu1 %v627_v6  ;;  %v2022_v7 = vpop.f32.mrf.mxu1 }
 0x414   :  { %650 = vrot.lane.b32.xlu0 %v2350_v32, %s2217_s5 }
 0x487   :  { %v632_v8 = vpop.xlane.xlu0 %631 }
 0x488   :  { %v634_v9 = vsub.f32 %v623_v61, %v632_v8 }
 0x48a   :  { %v637_v10 = vmul.f32 1.442695, %v634_v9 }
 0x48b   :  { %v651_v11 = vpop.permute.xlu0 %650 }
 0x48c   :  { %2155 = vpow2.f32 %v637_v10  ;;  %2029 = vmatpush3.msra.mxu1 %v651_v11 }
 0x48d   :  { %2038 = vmatprep.subr.mxu1 %v2213_v4 }
 0x497   :  { %v629_v12 = vpop.xlane.xlu1 %628 }
 0x498   :  { %v633_v13 = vsub.f32 %v545_v5, %v629_v12 }
 0x499   :  { %v2156_v14 = vpop.eup %2155 }
 0x49a   :  { %v635_v15 = vmul.f32 1.442695, %v633_v13  ;;  %v642_v16 = vsel %vm302_vm3, %v2156_v14, 0.0 }
 0x49b   :  { %643 = vadd.xlane.f32.xlu1 %v642_v16 }
 0x49c   :  { %2157 = vpow2.f32 %v635_v15 }
 0x4a9   :  { %v2158_v17 = vpop.eup %2157 }
 0x4aa   :  { %v639_v20 = vsel %vm302_vm3, %v2158_v17, 0.0 }
 0x4ab   :  { %640 = vadd.xlane.f32.xlu0 %v639_v20 }
 0x4ac   :  { %727 = vrot.lane.b32.xlu1 %v2375_v57, %s2217_s5 }
 0x4b0   :  { %805 = vrot.lane.b32.xlu1 %v2324_v22, %s2218_s6 }
 0x4b4   :  { %803 = vrot.lane.b32.xlu1 %v2336_v28, %s2219_s7 }
 0x4c1   :  { %883 = vrot.lane.b32.xlu0 %v2328_v25, %s2218_s6 }
 0x4c5   :  { %881 = vrot.lane.b32.xlu0 %v2347_v31, %s2219_s7 }
 0x524   :  { %v644_v21 = vpop.xlane.xlu1 %643 }
 0x525   :  { %2159 = vrcp.f32 %v644_v21 }
 0x528   :  { %v728_v23 = vpop.permute.xlu1 %727 }
 0x529   :  { %2034 = vmatpush3.msra.mxu0 %v728_v23 }
 0x52a   :  { %2043 = vmatprep.subr.mxu0 %v2213_v4 }
 0x52c   :  { %v806_v34 = vpop.permute.xlu1 %805 }
 0x530   :  { %v804_v36 = vpop.permute.xlu1 %803 }
 0x532   :  { %v2160_v24 = vpop.eup %2159 }
 0x533   :  { %v648_v26 = vmul.f32 %v2160_v24, %v2156_v14 }
 0x534   :  { %v641_v27 = vpop.xlane.xlu0 %640 }
 0x535   :  { %2161 = vrcp.f32 %v641_v27  ;;  %2036 = vmatmul.mubr.msk.f32.vlgmr.msra.gmra.mxu0 %vm302_vm3, %v648_v26 }
 0x536   :  { %2045 = vmatprep.mubr.msk.f32.mxu0 %vm2215_vm1, %v2213_v4 }
 0x538   :  { %v884_v29 = vpop.permute.xlu0 %883 }
 0x539   :  { %2044 = vmatpush3.xpose.msk.msra.mxu0 %vm148_vm2, %v884_v29 }
 0x53a   :  { %2053 = vmatprep.subr.mxu0 %v2213_v4 }
 0x53c   :  { %v882_v30 = vpop.permute.xlu0 %881 }
 0x53d   :  { %2046 = vmatmul.mubr.msk.f32.vlgmr.msra.gmra.mxu0 %vm148_vm2, %v882_v30 }
 0x53e   :  { %2055 = vmatprep.mubr.msk.f32.mxu0 %vm2215_vm1, %v2213_v4 }
 0x542   :  { %v2162_v33 = vpop.eup %2161 }
 0x543   :  { %v647_v35 = vmul.f32 %v2162_v33, %v2158_v17 }
 0x545   :  { %2031 = vmatmul.mubr.msk.f32.vlgmr.msra.gmra.mxu1 %vm302_vm3, %v647_v35 }
 0x546   :  { %2039 = vmatpush3.xpose.msk.msra.mxu1 %vm148_vm2, %v806_v34  ;;  %2040 = vmatprep.mubr.msk.f32.mxu1 %vm2215_vm1, %v2213_v4 }
 0x547   :  { %2048 = vmatprep.subr.mxu1 %v2213_v4 }
 0x549   :  { %2041 = vmatmul.mubr.msk.f32.vlgmr.msra.gmra.mxu1 %vm148_vm2, %v804_v36 }
 0x54a   :  { %2050 = vmatprep.mubr.msk.f32.mxu1 %vm2215_vm1, %v2213_v4 }
 0x5f5   :  { %v2428_v37 = vpop.f32.mrf.mxu0 }
 0x5f7   :  { %v2037_v38 = vpop.f32.mrf.mxu0 }
 0x5fd   :  { %v955_v39 = vpop.f32.mrf.mxu0 }
 0x5fe   :  { %v962_v40 = vsel %vm302_vm3, %v955_v39, -inf }
 0x5ff   :  { %963 = vmax.xlane.f32.xlu0 %v962_v40  ;;  %v2047_v41 = vpop.f32.mrf.mxu0  ;;  %v1499_v40 = vld [vmem:[%s2604_s2 + $0x20] sm:$0xff] }
 0x600   :  { %v1498_v41 = vld [vmem:[%s2604_s2 + $0x18] sm:$0xff] }
 0x605   :  { %v2431_v42 = vpop.f32.mrf.mxu1 }
 0x607   :  { %v2032_v43 = vpop.f32.mrf.mxu1 }
 0x608   :  { %v1496_v43 = vld [vmem:[%s2604_s2 + $0x8] sm:$0xff] }
 0x609   :  { %v877_v44 = vpop.f32.mrf.mxu1 }
 0x60a   :  { %v959_v45 = vsel %vm302_vm3, %v877_v44, -inf }
 0x60b   :  { %960 = vmax.xlane.f32.xlu1 %v959_v45  ;;  %v2042_v46 = vpop.f32.mrf.mxu1  ;;  %v1495_v45 = vld [vmem:[%s2604_s2] sm:$0xff] }
 0x615   :  { %981 = vrot.lane.b32.xlu0 %v2350_v32, %s2219_s7 }
 0x688   :  { %v964_v47 = vpop.xlane.xlu0 %963 }
 0x689   :  { %v966_v48 = vsub.f32 %v955_v39, %v964_v47  ;;  %v1500_v39 = vld [vmem:[%s2604_s2 + $0x28] sm:$0xff] }
 0x68b   :  { %v969_v49 = vmul.f32 1.442695, %v966_v48 }
 0x68c   :  { %v982_v50 = vpop.permute.xlu0 %981 }
 0x68d   :  { %2163 = vpow2.f32 %v969_v49  ;;  %2049 = vmatpush3.msra.mxu1 %v982_v50 }
 0x68e   :  { %2058 = vmatprep.subr.mxu1 %v2213_v4 }
 0x694   :  { %v961_v51 = vpop.xlane.xlu1 %960 }
 0x695   :  { %v965_v52 = vsub.f32 %v877_v44, %v961_v51 }
 0x697   :  { %v967_v53 = vmul.f32 1.442695, %v965_v52 }
 0x699   :  { %2165 = vpow2.f32 %v967_v53 }
 0x69a   :  { %v2164_v54 = vpop.eup %2163 }
 0x69b   :  { %v974_v55 = vsel %vm302_vm3, %v2164_v54, 0.0 }
 0x69c   :  { %975 = vadd.xlane.f32.xlu1 %v974_v55 }
 0x6a6   :  { %v2166_v56 = vpop.eup %2165 }
 0x6a7   :  { %v971_v58 = vsel %vm302_vm3, %v2166_v56, 0.0 }
 0x6a8   :  { %972 = vadd.xlane.f32.xlu0 %v971_v58 }
 0x6ad   :  { %1057 = vrot.lane.b32.xlu1 %v2375_v57, %s2219_s7 }
 0x6b1   :  { %1135 = vrot.lane.b32.xlu1 %v2324_v22, %s2220_s8 }
 0x6b5   :  { %1133 = vrot.lane.b32.xlu1 %v2336_v28, %s2221_s9 }
 0x6be   :  { %1213 = vrot.lane.b32.xlu0 %v2328_v25, %s2220_s8 }
 0x6c2   :  { %1211 = vrot.lane.b32.xlu0 %v2347_v31, %s2221_s9 }
 0x725   :  { %v976_v59 = vpop.xlane.xlu1 %975 }
 0x726   :  { %2167 = vrcp.f32 %v976_v59 }
 0x729   :  { %v1058_v60 = vpop.permute.xlu1 %1057 }
 0x72a   :  { %2054 = vmatpush3.msra.mxu0 %v1058_v60 }
 0x72b   :  { %2063 = vmatprep.subr.mxu0 %v2213_v4 }
 0x72d   :  { %v1136_v31 = vpop.permute.xlu1 %1135 }
 0x731   :  { %v973_v61 = vpop.xlane.xlu0 %972  ;;  %v1134_v3 = vpop.permute.xlu1 %1133 }
 0x732   :  { %2169 = vrcp.f32 %v973_v61 }
 0x733   :  { %v2168_v62 = vpop.eup %2167 }
 0x734   :  { %v980_v22 = vmul.f32 %v2168_v62, %v2164_v54  ;;  %v1921_v62 = vld [vmem:[%s2605_s3 + $0x3] ss:$0 sm:$0xff] }
 0x735   :  { %v1214_v63 = vpop.permute.xlu0 %1213 }
 0x736   :  { %2056 = vmatmul.mubr.msk.f32.vlgmr.msra.gmra.mxu0 %vm302_vm3, %v980_v22 }
 0x737   :  { %2064 = vmatpush3.xpose.msk.msra.mxu0 %vm148_vm2, %v1214_v63  ;;  %2065 = vmatprep.mubr.msk.f32.mxu0 %vm2215_vm1, %v2213_v4 }
 0x738   :  { %2073 = vmatprep.subr.mxu0 %v2213_v4 }
 0x739   :  { %v1212_v25 = vpop.permute.xlu0 %1211 }
 0x73a   :  { %2066 = vmatmul.mubr.msk.f32.vlgmr.msra.gmra.mxu0 %vm148_vm2, %v1212_v25 }
 0x73b   :  { %2075 = vmatprep.mubr.msk.f32.mxu0 %vm2215_vm1, %v2213_v4 }
 0x73f   :  { %v2170_v28 = vpop.eup %2169 }
 0x740   :  { %v979_v1 = vmul.f32 %v2170_v28, %v2166_v56 }
 0x742   :  { %2051 = vmatmul.mubr.msk.f32.vlgmr.msra.gmra.mxu1 %vm302_vm3, %v979_v1 }
 0x743   :  { %2059 = vmatpush3.xpose.msk.msra.mxu1 %vm148_vm2, %v1136_v31  ;;  %2060 = vmatprep.mubr.msk.f32.mxu1 %vm2215_vm1, %v2213_v4 }
 0x744   :  { %2068 = vmatprep.subr.mxu1 %v2213_v4 }
 0x746   :  { %2061 = vmatmul.mubr.msk.f32.vlgmr.msra.gmra.mxu1 %vm148_vm2, %v1134_v3 }
 0x747   :  { %2070 = vmatprep.mubr.msk.f32.mxu1 %vm2215_vm1, %v2213_v4 }
 0x7f6   :  { %v1129_v5 = vpop.f32.mrf.mxu0 }
 0x7f8   :  { %v2057_v6 = vpop.f32.mrf.mxu0 }
 0x7fa   :  { %v1285_v7 = vpop.f32.mrf.mxu0 }
 0x7fb   :  { %v1292_v8 = vsel %vm302_vm3, %v1285_v7, -inf }
 0x7fc   :  { %1293 = vmax.xlane.f32.xlu0 %v1292_v8  ;;  %v2067_v9 = vpop.f32.mrf.mxu0 }
 0x802   :  { %v1053_v10 = vpop.f32.mrf.mxu1 }
 0x804   :  { %v2052_v11 = vpop.f32.mrf.mxu1 }
 0x806   :  { %v1207_v12 = vpop.f32.mrf.mxu1 }
 0x807   :  { %v1289_v13 = vsel %vm302_vm3, %v1207_v12, -inf }
 0x808   :  { %1290 = vmax.xlane.f32.xlu1 %v1289_v13  ;;  %v2062_v14 = vpop.f32.mrf.mxu1  ;;  %v1638_v13 = vld [vmem:[%s2604_s2 + $0x70] sm:$0xff] }
 0x809   :  { %v1637_v14 = vld [vmem:[%s2604_s2 + $0x68] sm:$0xff] }
 0x885   :  { %v1294_v15 = vpop.xlane.xlu0 %1293 }
 0x886   :  { %v1296_v16 = vsub.f32 %v1285_v7, %v1294_v15  ;;  %v1636_v15 = vld [vmem:[%s2604_s2 + $0x60] sm:$0xff] }
 0x888   :  { %v1299_v17 = vmul.f32 1.442695, %v1296_v16  ;;  %v1635_v16 = vld [vmem:[%s2604_s2 + $0x58] sm:$0xff] }
 0x88a   :  { %2171 = vpow2.f32 %v1299_v17  ;;  %v1634_v17 = vld [vmem:[%s2604_s2 + $0x50] sm:$0xff] }
 0x891   :  { %v1291_v20 = vpop.xlane.xlu1 %1290 }
 0x892   :  { %v1295_v4 = vsub.f32 %v1207_v12, %v1291_v20  ;;  %v1633_v20 = vld [vmem:[%s2604_s2 + $0x48] sm:$0xff] }
 0x894   :  { %v1297_v21 = vmul.f32 1.442695, %v1295_v4  ;;  %v1632_v4 = vld [vmem:[%s2604_s2 + $0x40] sm:$0xff] }
 0x896   :  { %2173 = vpow2.f32 %v1297_v21 }
 0x897   :  { %v2172_v23 = vpop.eup %2171 }
 0x898   :  { %v1304_v24 = vsel %vm302_vm3, %v2172_v23, 0.0 }
 0x899   :  { %1305 = vadd.xlane.f32.xlu1 %v1304_v24 }
 0x8a3   :  { %v2174_v26 = vpop.eup %2173 }
 0x8a4   :  { %v1301_v27 = vsel %vm302_vm3, %v2174_v26, 0.0 }
 0x8a5   :  { %1302 = vadd.xlane.f32.xlu0 %v1301_v27 }
 0x8aa   :  { %1387 = vrot.lane.b32.xlu1 %v2375_v57, %s2221_s9 }
 0x8ae   :  { %1465 = vrot.lane.b32.xlu1 %v2431_v42, %s2220_s8  ;;  %v1497_v42 = vld [vmem:[%s2604_s2 + $0x10] sm:$0xff] }
 0x8b2   :  { %1473 = vrot.lane.b32.xlu1 %v1053_v10, %s2218_s6 }
 0x8bb   :  { %1311 = vrot.lane.b32.xlu0 %v2350_v32, %s2221_s9  ;;  %v1502_v32 = vld [vmem:[%s2604_s2 + $0x38] sm:$0xff] }
 0x8bf   :  { %1467 = vrot.lane.b32.xlu0 %v2428_v37, %s2220_s8  ;;  %v1501_v37 = vld [vmem:[%s2604_s2 + $0x30] sm:$0xff] }
 0x8c3   :  { %1475 = vrot.lane.b32.xlu0 %v1129_v5, %s2218_s6 }
 0x922   :  { %v1306_v29 = vpop.xlane.xlu1 %1305 }
 0x923   :  { %2175 = vrcp.f32 %v1306_v29 }
 0x926   :  { %v1388_v30 = vpop.permute.xlu1 %1387 }
 0x927   :  { %2074 = vmatpush3.msra.mxu0 %v1388_v30 }
 0x92a   :  { %v1466_v50 = vpop.permute.xlu1 %1465 }
 0x92b   :  { %v1487_v53 = vsel %vm148_vm2, %v2391_v0, %v1466_v50 }
 0x92e   :  { %v1303_v33 = vpop.xlane.xlu0 %1302  ;;  %v1474_v52 = vpop.permute.xlu1 %1473 }
 0x92f   :  { %2177 = vrcp.f32 %v1303_v33  ;;  %v1490_v55 = vsel %vm1489_vm4, %v1487_v53, %v1474_v52  ;;  %v1924_v33 = vld [vmem:[%s2605_s3 + $0x6] ss:$0 sm:$0xff] }
 0x930   :  { %v2176_v57 = vpop.eup %2175 }
 0x931   :  { %v1310_v34 = vmul.f32 %v2176_v57, %v2172_v23 }
 0x932   :  { %v1312_v35 = vpop.permute.xlu0 %1311 }
 0x933   :  { %2069 = vmatpush3.msra.mxu1 %v1312_v35  ;;  %2076 = vmatmul.mubr.msk.f32.vlgmr.msra.gmra.mxu0 %vm302_vm3, %v1310_v34 }
 0x934   :  { %2078 = vmatprep.subr.mxu1 %v1502_v32 }
 0x936   :  { %v1468_v49 = vpop.permute.xlu0 %1467 }
 0x937   :  { %v1488_v56 = vsel %vm148_vm2, %v2393_v2, %v1468_v49 }
 0x93a   :  { %v1476_v51 = vpop.permute.xlu0 %1475 }
 0x93b   :  { %v1491_v59 = vsel %vm1489_vm4, %v1488_v56, %v1476_v51 }
 0x93c   :  { %v2178_v36 = vpop.eup %2177 }
 0x93d   :  { %v1309_v38 = vmul.f32 %v2178_v36, %v2174_v26 }
 0x93f   :  { %2071 = vmatmul.mubr.msk.f32.vlgmr.msra.gmra.mxu1 %vm302_vm3, %v1309_v38  ;;  %v1925_v38 = vld [vmem:[%s2605_s3 + $0x7] ss:$0 sm:$0xff] }
 0x940   :  { %2079 = vmatpush3.msra.mxu1 %v1502_v32 }
 0x941   :  { %2080 = vmatprep.subr.mxu1 %v1501_v37 }
 0x942   :  { %2081 = vmatpush3.msra.mxu1 %v1501_v37 }
 0x943   :  { %2082 = vmatprep.subr.mxu1 %v1500_v39 }
 0x944   :  { %2083 = vmatpush3.msra.mxu1 %v1500_v39 }
 0x945   :  { %2084 = vmatprep.subr.mxu1 %v1499_v40 }
 0x946   :  { %2085 = vmatpush3.msra.mxu1 %v1499_v40  ;;  %v1745_v40 = vld [vmem:[%s2604_s2 + $0xb8] sm:$0xff] }
 0x947   :  { %2086 = vmatprep.subr.mxu1 %v1498_v41 }
 0x948   :  { %2087 = vmatpush3.msra.mxu1 %v1498_v41  ;;  %v1744_v41 = vld [vmem:[%s2604_s2 + $0xb0] sm:$0xff] }
 0x949   :  { %2088 = vmatprep.subr.mxu1 %v1497_v42 }
 0x94a   :  { %2089 = vmatpush3.msra.mxu1 %v1497_v42  ;;  %v1743_v42 = vld [vmem:[%s2604_s2 + $0xa8] sm:$0xff] }
 0x94b   :  { %2090 = vmatprep.subr.mxu1 %v1496_v43 }
 0x94c   :  { %2091 = vmatpush3.msra.mxu1 %v1496_v43  ;;  %v1742_v43 = vld [vmem:[%s2604_s2 + $0xa0] sm:$0xff] }
 0x94d   :  { %2092 = vmatprep.subr.mxu1 %v1495_v45 }
 0x94e   :  { %2093 = vmatpush3.msra.mxu1 %v1495_v45  ;;  %v1740_v45 = vld [vmem:[%s2604_s2 + $0x90] sm:$0xff] }
 0x94f   :  { %2116 = vmatprep.subr.mxu1 %v1745_v40 }
 0x9f3   :  { %v1459_v44 = vpop.f32.mrf.mxu0 }
 0x9f4   :  { %1483 = vrot.lane.b32.xlu0 %v1459_v44, %s2216_s30  ;;  %v1741_v44 = vld [vmem:[%s2604_s2 + $0x98] sm:$0xff] }
 0x9f5   :  { %v2077_v46 = vpop.f32.mrf.mxu0 }
 0x9f6   :  { %v1739_v46 = vld [vmem:[%s2604_s2 + $0x88] sm:$0xff] }
 0x9ff   :  { %v1383_v47 = vpop.f32.mrf.mxu1 }
 0xa00   :  { %1481 = vrot.lane.b32.xlu1 %v1383_v47, %s2216_s30  ;;  %v1738_v47 = vld [vmem:[%s2604_s2 + $0x80] sm:$0xff] }
 0xa01   :  { %v2072_v48 = vpop.f32.mrf.mxu1 }
 0xa02   :  { %v1926_v48 = vld [vmem:[%s2605_s3 + $0x4] ss:$0 sm:$0xff] }
 0xa66   :  { %v1484_v54 = vpop.permute.xlu0 %1483 }
 0xa67   :  { %v1494_v61 = vsel %vm1492_vm5, %v1491_v59, %v1484_v54 }
 0xa72   :  { %v1482_v58 = vpop.permute.xlu1 %1481 }
 0xa73   :  { %v1493_v60 = vsel %vm1492_vm5, %v1490_v55, %v1482_v58 }
 0xa74   :  { %2094 = vmatprep.mubr.msk.f32.mxu1 %vm36_vm0, %v1493_v60 }
 0xa75   :  { %2095 = vmatmul.mubr.msk.f32.vlgmr.msra.gmra.mxu1 %vm36_vm0, %v1494_v61 }
 0xa76   :  { %2117 = vmatpush3.msra.mxu1 %v1745_v40 }
 0xa77   :  { %2118 = vmatprep.subr.mxu1 %v1744_v41 }
 0xa78   :  { %2119 = vmatpush3.msra.mxu1 %v1744_v41 }
 0xa79   :  { %2120 = vmatprep.subr.mxu1 %v1743_v42 }
 0xa7a   :  { %2121 = vmatpush3.msra.mxu1 %v1743_v42 }
 0xa7b   :  { %2122 = vmatprep.subr.mxu1 %v1742_v43 }
 0xa7c   :  { %2123 = vmatpush3.msra.mxu1 %v1742_v43 }
 0xa7d   :  { %2124 = vmatprep.subr.mxu1 %v1741_v44 }
 0xa7e   :  { %2125 = vmatpush3.msra.mxu1 %v1741_v44 }
 0xa7f   :  { %2126 = vmatprep.subr.mxu1 %v1740_v45 }
 0xa80   :  { %2127 = vmatpush3.msra.mxu1 %v1740_v45 }
 0xa81   :  { %2128 = vmatprep.subr.mxu1 %v1739_v46 }
 0xa82   :  { %2129 = vmatpush3.msra.mxu1 %v1739_v46 }
 0xa83   :  { %2130 = vmatprep.subr.mxu1 %v1738_v47 }
 0xa84   :  { %2131 = vmatpush3.msra.mxu1 %v1738_v47 }
 0xb35   :  { %v2096_v22 = vpop.f32.mrf.mxu1 }
 0xb36   :  { %v1586_v0 = vadd.f32 %v2096_v22, %v1921_v62 }
 0xb37   :  { %v1580_v63 = vpop.f32.mrf.mxu1 }
 0xb38   :  { %v1581_v25 = vadd.f32 %v1921_v62, %v1580_v63  ;;  %v1590_v28 = vadd.f32 %v1586_v0, %v2316_v19  ;;  %v1931_v0 = vld [vmem:[%s2605_s3 + $0x5] ss:$0 sm:$0xff] }
 0xb3a   :  { %v1596_v2 = vsel %vm36_vm0, %v1590_v28, 0.0  ;;  %v1589_v31 = vadd.f32 %v1581_v25, %v2307_v18  ;;  %v1639_v18 = vld [vmem:[%s2604_s2 + $0x78] sm:$0xff] }
 0xb3b   :  { %1597 = vadd.xlane.f32.xlu0 %v1596_v2  ;;  %2097 = vmatprep.subr.mxu0 %v1639_v18 }
 0xb3c   :  { %v1593_v1 = vsel %vm36_vm0, %v1589_v31, 0.0  ;;  %2098 = vmatpush3.msra.mxu0 %v1639_v18 }
 0xb3d   :  { %1594 = vadd.xlane.f32.xlu1 %v1593_v1  ;;  %2099 = vmatprep.subr.mxu0 %v1638_v13 }
 0xb3e   :  { %2100 = vmatpush3.msra.mxu0 %v1638_v13 }
 0xb3f   :  { %2101 = vmatprep.subr.mxu0 %v1637_v14 }
 0xb40   :  { %2102 = vmatpush3.msra.mxu0 %v1637_v14 }
 0xb41   :  { %2103 = vmatprep.subr.mxu0 %v1636_v15 }
 0xb42   :  { %2104 = vmatpush3.msra.mxu0 %v1636_v15 }
 0xb43   :  { %2105 = vmatprep.subr.mxu0 %v1635_v16 }
 0xb44   :  { %2106 = vmatpush3.msra.mxu0 %v1635_v16 }
 0xb45   :  { %2107 = vmatprep.subr.mxu0 %v1634_v17 }
 0xb46   :  { %2108 = vmatpush3.msra.mxu0 %v1634_v17 }
 0xb47   :  { %2109 = vmatprep.subr.mxu0 %v1633_v20 }
 0xb48   :  { %2110 = vmatpush3.msra.mxu0 %v1633_v20 }
 0xb49   :  { %2111 = vmatprep.subr.mxu0 %v1632_v4 }
 0xb4a   :  { %2112 = vmatpush3.msra.mxu0 %v1632_v4 }
 0xbc4   :  { %v1598_v3 = vpop.xlane.xlu0 %1597 }
 0xbc5   :  { %v1601_v5 = vmul.f32 0.015625, %v1598_v3 }
 0xbc6   :  { %v1595_v6 = vpop.xlane.xlu1 %1594 }
 0xbc7   :  { %v1603_v7 = vsub.f32 %v1590_v28, %v1601_v5  ;;  %v1600_v8 = vmul.f32 0.015625, %v1595_v6 }
 0xbc9   :  { %v1602_v9 = vsub.f32 %v1589_v31, %v1600_v8  ;;  %v1605_v10 = vmul.f32 %v1603_v7, %v1603_v7 }
 0xbcb   :  { %v1609_v11 = vsel %vm36_vm0, %v1605_v10, 0.0  ;;  %v1604_v12 = vmul.f32 %v1602_v9, %v1602_v9 }
 0xbcc   :  { %1610 = vadd.xlane.f32.xlu1 %v1609_v11 }
 0xbcd   :  { %v1606_v19 = vsel %vm36_vm0, %v1604_v12, 0.0 }
 0xbce   :  { %1607 = vadd.xlane.f32.xlu0 %v1606_v19 }
 0xc55   :  { %v1611_v21 = vpop.xlane.xlu1 %1610 }
 0xc56   :  { %v1613_v23 = vmul.f32 0.015625, %v1611_v21 }
 0xc57   :  { %v1608_v24 = vpop.xlane.xlu0 %1607 }
 0xc58   :  { %v1615_v26 = vadd.f32 1e-05, %v1613_v23  ;;  %v1612_v27 = vmul.f32 0.015625, %v1608_v24  ;;  %v1934_v23 = vld [vmem:[%s2605_s3 + $0x8] ss:$0 sm:$0xff] }
 0xc5a   :  { %2179 = vrsqrt.f32 %v1615_v26  ;;  %v1614_v29 = vadd.f32 1e-05, %v1612_v27  ;;  %v1935_v27 = vld [vmem:[%s2605_s3 + $0x9] ss:$0 sm:$0xff] }
 0xc5c   :  { %2181 = vrsqrt.f32 %v1614_v29 }
 0xc67   :  { %v2180_v30 = vpop.eup %2179 }
 0xc68   :  { %v1619_v57 = vmul.f32 %v2180_v30, %v1603_v7 }
 0xc69   :  { %v2182_v34 = vpop.eup %2181 }
 0xc6a   :  { %v1618_v35 = vmul.f32 %v2182_v34, %v1602_v9  ;;  %v1625_v36 = vmul.f32 %v1924_v33, %v1619_v57 }
 0xc6c   :  { %v1624_v32 = vmul.f32 %v1924_v33, %v1618_v35  ;;  %v1631_v39 = vadd.f32 %v1925_v38, %v1625_v36 }
 0xc6e   :  { %v1630_v37 = vadd.f32 %v1925_v38, %v1624_v32 }
 0xc70   :  { %2113 = vmatprep.mubr.msk.f32.mxu0 %vm36_vm0, %v1630_v37 }
 0xc71   :  { %2114 = vmatmul.mubr.msk.f32.vlgmr.msra.gmra.mxu0 %vm36_vm0, %v1631_v39 }
 0xd31   :  { %v2115_v49 = vpop.f32.mrf.mxu0 }
 0xd32   :  { %v1723_v50 = vadd.f32 %v2115_v49, %v1926_v48 }
 0xd33   :  { %v1717_v51 = vpop.f32.mrf.mxu0 }
 0xd34   :  { %v1729_v52 = vmin.f32 %v1723_v50, 0.0  ;;  %v1718_v53 = vadd.f32 %v1926_v48, %v1717_v51  ;;  %vm1727_vm7 = vcmp.gt.f32.partialorder %v1723_v50, 0.0 }
 0xd36   :  { %v1732_v54 = vmul.f32 1.442695, %v1729_v52  ;;  %v1728_v55 = vmin.f32 %v1718_v53, 0.0  ;;  %vm1726_vm6 = vcmp.gt.f32.partialorder %v1718_v53, 0.0 }
 0xd38   :  { %2183 = vpow2.f32 %v1732_v54  ;;  %v1730_v56 = vmul.f32 1.442695, %v1728_v55 }
 0xd3a   :  { %2185 = vpow2.f32 %v1730_v56 }
 0xd45   :  { %v2184_v58 = vpop.eup %2183 }
 0xd46   :  { %v1930_v60 = vadd.f32 -1.0, %v2184_v58 }
 0xd47   :  { %v2186_v59 = vpop.eup %2185 }
 0xd48   :  { %v1929_v61 = vadd.f32 -1.0, %v2186_v59  ;;  %v1737_v22 = vsel %vm1727_vm7, %v1723_v50, %v1930_v60 }
 0xd4a   :  { %v1736_v62 = vsel %vm1726_vm6, %v1718_v53, %v1929_v61 }
 0xd4b   :  { %2132 = vmatprep.mubr.msk.f32.mxu1 %vm36_vm0, %v1736_v62 }
 0xd4c   :  { %2133 = vmatmul.mubr.msk.f32.vlgmr.msra.gmra.mxu1 %vm36_vm0, %v1737_v22 }
 0xe0c   :  { %v2134_v63 = vpop.f32.mrf.mxu1 }
 0xe0d   :  { %v1829_v25 = vadd.f32 %v2134_v63, %v1931_v0 }
 0xe0e   :  { %v1823_v28 = vpop.f32.mrf.mxu1 }
 0xe0f   :  { %v1824_v2 = vadd.f32 %v1931_v0, %v1823_v28  ;;  %v1833_v31 = vadd.f32 %v1829_v25, %v1631_v39 }
 0xe11   :  { %v1839_v1 = vsel %vm36_vm0, %v1833_v31, 0.0  ;;  %v1832_v3 = vadd.f32 %v1824_v2, %v1630_v37 }
 0xe12   :  { %1840 = vadd.xlane.f32.xlu1 %v1839_v1 }
 0xe13   :  { %v1836_v5 = vsel %vm36_vm0, %v1832_v3, 0.0 }
 0xe14   :  { %1837 = vadd.xlane.f32.xlu0 %v1836_v5 }
 0xe9b   :  { %v1841_v6 = vpop.xlane.xlu1 %1840 }
 0xe9c   :  { %v1843_v7 = vmul.f32 0.015625, %v1841_v6 }
 0xe9d   :  { %v1838_v8 = vpop.xlane.xlu0 %1837 }
 0xe9e   :  { %v1845_v9 = vsub.f32 %v1833_v31, %v1843_v7  ;;  %v1842_v10 = vmul.f32 0.015625, %v1838_v8 }
 0xea0   :  { %v1844_v11 = vsub.f32 %v1832_v3, %v1842_v10  ;;  %v1847_v12 = vmul.f32 %v1845_v9, %v1845_v9 }
 0xea2   :  { %v1851_v19 = vsel %vm36_vm0, %v1847_v12, 0.0  ;;  %v1846_v18 = vmul.f32 %v1844_v11, %v1844_v11 }
 0xea3   :  { %1852 = vadd.xlane.f32.xlu1 %v1851_v19 }
 0xea4   :  { %v1848_v13 = vsel %vm36_vm0, %v1846_v18, 0.0 }
 0xea5   :  { %1849 = vadd.xlane.f32.xlu0 %v1848_v13 }
 0xf2c   :  { %v1853_v14 = vpop.xlane.xlu1 %1852 }
 0xf2d   :  { %v1855_v15 = vmul.f32 0.015625, %v1853_v14 }
 0xf2e   :  { %v1850_v16 = vpop.xlane.xlu0 %1849 }
 0xf2f   :  { %v1857_v17 = vadd.f32 1e-05, %v1855_v15  ;;  %v1854_v20 = vmul.f32 0.015625, %v1850_v16 }
 0xf31   :  { %2187 = vrsqrt.f32 %v1857_v17  ;;  %v1856_v4 = vadd.f32 1e-05, %v1854_v20 }
 0xf33   :  { %2189 = vrsqrt.f32 %v1856_v4 }
 0xf3e   :  { %v2188_v21 = vpop.eup %2187 }
 0xf3f   :  { %v1861_v24 = vmul.f32 %v2188_v21, %v1845_v9 }
 0xf40   :  { %v2190_v26 = vpop.eup %2189 }
 0xf41   :  { %v1860_v29 = vmul.f32 %v2190_v26, %v1844_v11  ;;  %v1867_v30 = vmul.f32 %v1934_v23, %v1861_v24 }
 0xf43   :  { %v1866_v33 = vmul.f32 %v1934_v23, %v1860_v29  ;;  %v1873_v57 = vadd.f32 %v1935_v27, %v1867_v30 }
 0xf45   :  { %v1872_v34 = vadd.f32 %v1935_v27, %v1866_v33  ;;  %1875 = vst.msk [vmem:[#allocation2 + $0x8] sm:$0xff] %vm36_vm0, %v1873_v57 }
 0xf47   :  { %1874 = vst.msk [vmem:[#allocation2] sm:$0xff] %vm36_vm0, %v1872_v34 }
 0xf48   :  { %2202 = shalt.err (!%p2199_p4)
}
 0xf49   :  { %s2223_s3 = smov 128   ;;  %s2224_s18 = smov 8  }
 0xf4a   :  { %1887 = dma.vmem_to_hbm [thread:$0]  %s1882_s16, 256, %s2606_s4, [#allocation3], %s2223_s3, %s2223_s3, %s2224_s18  }
 0xf4b   :  { %2211 = dma.done.wait [#allocation3], 256  }
 0xf4c   :  { %2212 = vsyncadd [#allocation3], 4294967040 }
 0xf4d   :  { %1891 = vsyncpa [#allocation3], 1 }

</bundles_post_ra>
